<compile_context>
chip_gen: v7x
topology: tpu7x:2x2x1
jax: 0.10.0
libtpu: 0.0.40
codegen_flags: <defaults>
</compile_context>

<pallas_src>
import functools
import math

import jax
import jax.numpy as jnp
from jax.experimental import pallas as pl
from jax.experimental.pallas import tpu as pltpu


def _round_up(x, m):
    return ((x + m - 1) // m) * m


def _interface_kernel(logits_ref, labels_ref, side_ref, out_ref, *, tile_c):
    # logits_ref: (TB, TC) f32   labels_ref: (TB, 1) i32
    # side_ref:   (TB, 4)  f32 = [s*cos(m_hat), s*sin(m_hat), s*cos(theta_t+margin), pad]
    c = logits_ref[...]
    lab = labels_ref[...]

    # Per-row local label for this class tile; compare against plain iota (no full-tile add).
    lab_local = lab - pl.program_id(1) * tile_c
    col = jax.lax.broadcasted_iota(jnp.int32, c.shape, 1)
    is_target = (col == lab_local) & (lab != -1)

    s_cos_mh = side_ref[:, 0:1]
    s_sin_mh = side_ref[:, 1:2]
    s_tgt = side_ref[:, 2:3]

    # cos(acos(c) - m_hat) = c * cos(m_hat) + sin(acos(c)) * sin(m_hat),
    # sin(acos(c)) = sqrt(1 - c^2) (>= 0 since acos(c) in [0, pi]).
    # NaN propagation for |c| > 1 matches torch's acos_().cos_().
    sin_theta = jnp.sqrt(1.0 - c * c)
    general = c * s_cos_mh + sin_theta * s_sin_mh

    out_ref[...] = jnp.where(is_target, s_tgt, general)


def interface_forward(logits, labels, center_logits, *, s=64.0, margin=0.5,
                      mid=0.2, alpha=0.1, is_dyn=False,
                      tb_max=256, tc_max=2048):
    """JAX / Pallas equivalent of InterFace.forward (single device)."""
    B, C = logits.shape
    logits = logits.astype(jnp.float32)
    labels = labels.reshape(B, 1).astype(jnp.int32)
    center = center_logits.reshape(B, 1).astype(jnp.float32)

    # ---- per-row scalar prep (O(B) glue, plain JAX) ----
    valid = labels != -1
    safe_lab = jnp.where(valid, labels, 0)
    tgt_cos = jnp.take_along_axis(logits, safe_lab, axis=1)
    tgt_cos = jnp.where(valid, tgt_cos, 0.0)           # torch: rows w/o label gather 0
    theta_t = jnp.arccos(tgt_cos)                      # (B, 1)
    theta_c = jnp.clip(jnp.arccos(center), 0.01, math.pi)
    if is_dyn:
        m_hat = alpha * (jnp.exp(-mid / theta_c) - jnp.exp(-theta_t / theta_c))
    else:
        m_hat = alpha * (math.e ** (-mid) - jnp.exp(-theta_t / theta_c))
    s = float(s)
    # Fold scale into per-row side values; pack into one (B, 4) array -> single small DMA.
    side = jnp.concatenate(
        [s * jnp.cos(m_hat), s * jnp.sin(m_hat),
         s * jnp.cos(theta_t + margin), jnp.zeros_like(m_hat)], axis=1)

    # ---- tile selection + padding (remainder handling) ----
    tb = min(tb_max, _round_up(B, 8))
    tc = min(tc_max, _round_up(C, 128))
    Bp = _round_up(B, tb)
    Cp = _round_up(C, tc)
    if (Bp, Cp) != (B, C):
        logits = jnp.pad(logits, ((0, Bp - B), (0, Cp - C)))
        labels = jnp.pad(labels, ((0, Bp - B), (0, 0)), constant_values=-1)
        side = jnp.pad(side, ((0, Bp - B), (0, 0)))

    grid = (Bp // tb, Cp // tc)
    kernel = functools.partial(_interface_kernel, tile_c=tc)

    out = pl.pallas_call(
        kernel,
        out_shape=jax.ShapeDtypeStruct((Bp, Cp), jnp.float32),
        grid_spec=pl.GridSpec(
            grid=grid,
            in_specs=[
                pl.BlockSpec((tb, tc), lambda i, j: (i, j)),  # logits tile
                pl.BlockSpec((tb, 1), lambda i, j: (i, 0)),   # labels (int32)
                pl.BlockSpec((tb, 4), lambda i, j: (i, 0)),   # packed per-row side values
            ],
            out_specs=pl.BlockSpec((tb, tc), lambda i, j: (i, j)),
        ),
        compiler_params=pltpu.CompilerParams(
            dimension_semantics=("parallel", "parallel"),
            vmem_limit_bytes=32 * 1024 * 1024),
        cost_estimate=pl.CostEstimate(
            flops=6 * Bp * Cp, transcendentals=0,
            bytes_accessed=2 * Bp * Cp * 4),
    )(logits, labels, side)

    if (Bp, Cp) != (B, C):
        out = out[:B, :C]
    return out


def interface_ref(logits, labels, center_logits, *, s=64.0, margin=0.5,
                  mid=0.2, alpha=0.1, is_dyn=False):
    """Pure-JAX transliteration of the torch forward (world_size == 1)."""
    B, C = logits.shape
    lab = labels.reshape(B, 1)
    valid = lab != -1
    safe = jnp.where(valid, lab, 0)
    tgt_cos = jnp.where(valid, jnp.take_along_axis(logits, safe, axis=1), 0.0)
    theta = jnp.arccos(logits)
    target_val = jnp.cos(jnp.arccos(jnp.take_along_axis(logits, safe, axis=1)) + margin)
    theta_t = jnp.arccos(tgt_cos)
    theta_c = jnp.clip(jnp.arccos(center_logits.reshape(B, 1)), 0.01, math.pi)
    if is_dyn:
        m_hat = alpha * (jnp.exp(-mid / theta_c) - jnp.exp(-theta_t / theta_c))
    else:
        m_hat = alpha * (math.e ** (-mid) - jnp.exp(-theta_t / theta_c))
    out = jnp.cos(theta - m_hat)
    col = jnp.arange(C)[None, :]
    out = jnp.where((col == lab) & valid, target_val, out)
    return out * s


if __name__ == "__main__":
    key = jax.random.PRNGKey(0)

    # case 1: aligned small shapes
    B, C = 16, 256
    k1, k2, k3 = jax.random.split(key, 3)
    logits = jax.random.uniform(k1, (B, C), jnp.float32, minval=-0.99, maxval=0.99)
    labels = jax.random.randint(k2, (B,), 0, C, jnp.int32)
    labels = labels.at[3].set(-1)  # one row without a local label (model-parallel case)
    center_logits = jax.random.uniform(k3, (B, 1), jnp.float32, minval=0.1, maxval=0.9)

    out = jax.block_until_ready(interface_forward(logits, labels, center_logits))
    ref = interface_ref(logits, labels, center_logits)
    assert out.shape == (B, C) and out.dtype == jnp.float32
    assert jnp.allclose(out, ref, atol=1e-3, rtol=1e-4), "mismatch vs reference (aligned)"

    # case 2: ragged shapes exercising the pad-and-slice remainder path
    B2, C2 = 13, 300
    k4, k5, k6 = jax.random.split(jax.random.PRNGKey(1), 3)
    logits2 = jax.random.uniform(k4, (B2, C2), jnp.float32, minval=-0.99, maxval=0.99)
    labels2 = jax.random.randint(k5, (B2,), 0, C2, jnp.int32)
    labels2 = labels2.at[0].set(-1)
    center2 = jax.random.uniform(k6, (B2, 1), jnp.float32, minval=0.1, maxval=0.9)

    out2 = jax.block_until_ready(interface_forward(logits2, labels2, center2))
    ref2 = interface_ref(logits2, labels2, center2)
    assert out2.shape == (B2, C2)
    assert jnp.allclose(out2, ref2, atol=1e-3, rtol=1e-4), "mismatch vs reference (ragged)"

    # TODO(synk): torch.distributed.all_gather of target logits is emulated with
    # world_size=1 (single device); a multi-chip version would use
    # pltpu.make_async_remote_copy + barrier semaphores.
    print("KERNEL_OK")
</pallas_src>

<mosaic_0001>
module attributes {stable_mosaic.version = 11 : i64} {
  func.func @_interface_kernel(%arg0: i32, %arg1: i32, %arg2: memref<16x256xf32, #tpu.memory_space<vmem>>, %arg3: memref<16x1xi32, #tpu.memory_space<vmem>>, %arg4: memref<16x4xf32, #tpu.memory_space<vmem>>, %arg5: memref<16x256xf32, #tpu.memory_space<vmem>>) attributes {dimension_semantics = [#tpu.dimension_semantics<parallel>, #tpu.dimension_semantics<parallel>], iteration_bounds = array<i64: 1, 1>, scalar_prefetch = 0 : i64, scratch_operands = 0 : i64, tpu.core_type = #tpu.core_type<tc>, window_params = [{transform_indices = @transform_0, window_bounds = array<i64: 16, 256>}, {transform_indices = @transform_1, window_bounds = array<i64: 16, 1>}, {transform_indices = @transform_2, window_bounds = array<i64: 16, 4>}, {transform_indices = @transform_3, window_bounds = array<i64: 16, 256>}]} {
    %c0 = arith.constant 0 : index
    %c0_0 = arith.constant 0 : index
    %0 = vector.load %arg2[%c0, %c0_0] : memref<16x256xf32, #tpu.memory_space<vmem>>, vector<16x256xf32>
    %c0_1 = arith.constant 0 : index
    %c0_2 = arith.constant 0 : index
    %1 = vector.load %arg3[%c0_1, %c0_2] : memref<16x1xi32, #tpu.memory_space<vmem>>, vector<16x1xi32>
    %c256_i32 = arith.constant 256 : i32
    %2 = arith.muli %arg1, %c256_i32 : i32
    %3 = vector.broadcast %2 : i32 to vector<16x1xi32>
    %4 = arith.subi %1, %3 : vector<16x1xi32>
    %5 = tpu.iota {dimensions = array<i32: 1>} : vector<16x256xi32>
    %6 = vector.broadcast %4 : vector<16x1xi32> to vector<16x256xi32>
    %7 = arith.cmpi eq, %5, %6 : vector<16x256xi32>
    %c-1_i32 = arith.constant -1 : i32
    %8 = vector.broadcast %c-1_i32 : i32 to vector<16x1xi32>
    %9 = arith.cmpi ne, %1, %8 : vector<16x1xi32>
    %10 = vector.broadcast %9 : vector<16x1xi1> to vector<16x256xi1>
    %11 = arith.andi %7, %10 : vector<16x256xi1>
    %c0_3 = arith.constant 0 : index
    %c0_4 = arith.constant 0 : index
    %12 = vector.load %arg4[%c0_3, %c0_4] : memref<16x4xf32, #tpu.memory_space<vmem>>, vector<16x1xf32>
    %c0_5 = arith.constant 0 : index
    %c1 = arith.constant 1 : index
    %13 = vector.load %arg4[%c0_5, %c1] : memref<16x4xf32, #tpu.memory_space<vmem>>, vector<16x1xf32>
    %c0_6 = arith.constant 0 : index
    %c2 = arith.constant 2 : index
    %14 = vector.load %arg4[%c0_6, %c2] : memref<16x4xf32, #tpu.memory_space<vmem>>, vector<16x1xf32>
    %15 = arith.mulf %0, %0 : vector<16x256xf32>
    %cst = arith.constant 1.000000e+00 : f32
    %16 = vector.broadcast %cst : f32 to vector<16x256xf32>
    %17 = arith.subf %16, %15 : vector<16x256xf32>
    %18 = math.sqrt %17 : vector<16x256xf32>
    %19 = vector.broadcast %12 : vector<16x1xf32> to vector<16x256xf32>
    %20 = arith.mulf %0, %19 : vector<16x256xf32>
    %21 = vector.broadcast %13 : vector<16x1xf32> to vector<16x256xf32>
    %22 = arith.mulf %18, %21 : vector<16x256xf32>
    %23 = arith.addf %20, %22 : vector<16x256xf32>
    %24 = vector.shape_cast %14 : vector<16x1xf32> to vector<16x1xf32>
    %25 = vector.broadcast %24 : vector<16x1xf32> to vector<16x256xf32>
    %26 = arith.select %11, %25, %23 : vector<16x256xi1>, vector<16x256xf32>
    %c0_7 = arith.constant 0 : index
    %c0_8 = arith.constant 0 : index
    %27 = vector.load %arg5[%c0_7, %c0_8] : memref<16x256xf32, #tpu.memory_space<vmem>>, vector<16x256xf32>
    tpu.vector_store %arg5[%c0_7, %c0_8], %26 {strides = array<i32>} : memref<16x256xf32, #tpu.memory_space<vmem>>, vector<16x256xf32>,
    return
  }
  func.func @transform_0(%arg0: i32, %arg1: i32) -> (i32, i32) {
    %c0_i32 = arith.constant 0 : i32
    return %arg0, %arg1 : i32, i32
  }
  func.func @transform_1(%arg0: i32, %arg1: i32) -> (i32, i32) {
    %c0_i32 = arith.constant 0 : i32
    %c0_i32_0 = arith.constant 0 : i32
    return %arg0, %c0_i32 : i32, i32
  }
  func.func @transform_2(%arg0: i32, %arg1: i32) -> (i32, i32) {
    %c0_i32 = arith.constant 0 : i32
    %c0_i32_0 = arith.constant 0 : i32
    return %arg0, %c0_i32 : i32, i32
  }
  func.func @transform_3(%arg0: i32, %arg1: i32) -> (i32, i32) {
    %c0_i32 = arith.constant 0 : i32
    return %arg0, %arg1 : i32, i32
  }
}

</mosaic_0001>

<bundles_post_ra>
// kernel: tpu_custom_call.1
= control target key start
LH: loop header
LB: loop body
LE: loop exit
PB: predicated region body
PF: predicated region fallthrough
CT: control target
= control target key end

     0   :  { %v197_v1 = vmov 1   ;;  %v198_v2 = vmov 0   ;;  %s266_s0 = inlined_call_operand.vmem [shape: f32[16,256], index: 0, kind: input, shape index: {}]   ;;  %s267_s1 = inlined_call_operand.vmem [shape: s32[16,1], index: 1, kind: input, shape index: {}]   ;;  %s268_s2 = inlined_call_operand.vmem [shape: f32[16,4], index: 2, kind: input, shape index: {}]   ;;  %s269_s3 = inlined_call_operand.hbm [shape: f32[16,256], index: 3, kind: output, shape index: {}]  }
   0x1   :  { %v54_v0 = vld [vmem:[%s268_s2] sm:$0xff]  ;;  %161 = vset.pattern.permute.xlu1 %v197_v1  ;;  %160 = vset.pattern.permute.xlu0 %v198_v2 }
   0x2   :  { %107 = vperm.xlu1 %161, %v54_v0   ;;  %94 = vperm.xlu0 %160, %v54_v0  }
   0x3   :  { %8 = vsyncpa [#allocation3], 0  ;;  %v55_v3 = vld [vmem:[%s268_s2 + $0x8] sm:$0xff]  ;;  %v19_v4 = vld [vmem:[%s267_s1] sm:$0xff]  ;;  %v199_v8 = vmov 2   ;;  %v25_v31 = vlaneseq }
   0x4   :  { %v20_v5 = vld [vmem:[%s267_s1 + $0x8] sm:$0xff]  ;;  %vm38_vm0 = vcmp.ne.s32.totalorder %v19_v4, 4294967295  ;;  %v15_v9 = vld [vmem:[%s266_s0] sm:$0xff]  ;;  %v17_v11 = vld [vmem:[%s266_s0 + $0x10] sm:$0xff] }
   0x5   :  { %vm39_vm1 = vcmp.ne.s32.totalorder %v20_v5, 4294967295  ;;  %v40_v6 = vsel %vm38_vm0, 1, %v198_v2  ;;  %v16_v10 = vld [vmem:[%s266_s0 + $0x8] sm:$0xff]  ;;  %v56_v12 = vmul.f32 %v15_v9, %v15_v9  ;;  %v18_v13 = vld [vmem:[%s266_s0 + $0x18] sm:$0xff]  ;;  %v58_v15 = vmul.f32 %v17_v11, %v17_v11  ;;  %s200_s0 = smov [#allocation2]  }
   0x6   :  { %111 = vperm.xlu1 %161, %v55_v3   ;;  %99 = vperm.xlu0 %160, %v55_v3   ;;  %v41_v7 = vsel %vm39_vm1, 1, %v198_v2  ;;  %v57_v14 = vmul.f32 %v16_v10, %v16_v10  ;;  %v59_v16 = vmul.f32 %v18_v13, %v18_v13  ;;  %v26_v42 = vand.u32 127, %v25_v31  ;;  %s143_s26 = sshll.u32 %s200_s0, 4  ;;  %s144_s26 = int_to_ptr.vmem [resolvable:$true] %s143_s26 }
   0x7   :  { %v60_v17 = vsub.f32 1.0, %v56_v12  ;;  %v62_v19 = vsub.f32 1.0, %v58_v15  ;;  %s173_s27 = scalar_lea.vmem %s144_s26, 512  ;;  %p178_p1 = scmp.lt.s32.totalorder %s144_s26, %s144_s26 }
   0x8   :  { %v61_v18 = vsub.f32 1.0, %v57_v14  ;;  %v63_v20 = vsub.f32 1.0, %v59_v16  ;;  %v27_v50 = vadd.s32 128, %v26_v42  ;;  %p174_p0 = scmp.ne.s32.totalorder %s144_s26, %s173_s27  ;;  %p179_p2 = scmp.lt.s32.totalorder %s173_s27, %s173_s27 }
   0x9   :  { %165 = vrsqrt.f32 %v60_v17  ;;  %vm66_vm2 = vcmp.eq.f32.partialorder %v60_v17, inf  ;;  %vm80_vm4 = vcmp.eq.f32.partialorder %v62_v19, inf  ;;  %vm68_vm5 = vcmp.eq.f32.partialorder %v60_v17, 0.0 }
   0xa   :  { %162 = vset.pattern.permute.xlu1 %v198_v2  ;;  %29 = vperm.xlu0 %160, %v19_v4   ;;  %167 = vrsqrt.f32 %v61_v18  ;;  %vm73_vm3 = vcmp.eq.f32.partialorder %v61_v18, inf  ;;  %v69_v32 = vand.u32 2147483648, %v60_v17  ;;  %vm87_vm6 = vcmp.eq.f32.partialorder %v63_v20, inf  ;;  %p180_p3 = por %p179_p2, %p178_p1 }
   0xb   :  { %32 = vperm.xlu1 %162, %v20_v5   ;;  %169 = vrsqrt.f32 %v62_v19  ;;  %vm75_vm7 = vcmp.eq.f32.partialorder %v61_v18, 0.0  ;;  %v76_v36 = vand.u32 2147483648, %v61_v18  ;;  %v83_v37 = vand.u32 2147483648, %v62_v19 }
   0xc   :  { %171 = vrsqrt.f32 %v63_v20  ;;  %vm82_vm8 = vcmp.eq.f32.partialorder %v62_v19, 0.0  ;;  %v90_v40 = vand.u32 2147483648, %v63_v20  ;;  %vm89_vm9 = vcmp.eq.f32.partialorder %v63_v20, 0.0  ;;  %p181_p4 = pnand %p180_p3, %p174_p0 }
   0xe   :  { %43 = vperm.xlu0 %160, %v40_v6  }
   0xf   :  { %46 = vperm.xlu1 %162, %v41_v7  }
  0x12   :  { %163 = vset.pattern.permute.xlu0 %v199_v8 }
  0x13   :  { %164 = vset.pattern.permute.xlu1 %v199_v8  ;;  %123 = vperm.xlu0 %163, %v54_v0   ;;  %v166_v21 = vpop.eup %165 }
  0x14   :  { %127 = vperm.xlu1 %164, %v55_v3   ;;  %v168_v22 = vpop.eup %167  ;;  %v65_v27 = vmul.f32 %v166_v21, %v60_v17 }
  0x15   :  { %v170_v23 = vpop.eup %169  ;;  %v72_v28 = vmul.f32 %v168_v22, %v61_v18 }
  0x16   :  { %v172_v24 = vpop.eup %171  ;;  %v79_v29 = vmul.f32 %v170_v23, %v62_v19  ;;  %v67_v35 = vsel %vm66_vm2, %v60_v17, %v65_v27 }
  0x17   :  { %v86_v30 = vmul.f32 %v172_v24, %v63_v20  ;;  %v74_v38 = vsel %vm73_vm3, %v61_v18, %v72_v28  ;;  %v70_v43 = vsel %vm68_vm5, %v69_v32, %v67_v35 }
  0x18   :  { %v81_v39 = vsel %vm80_vm4, %v62_v19, %v79_v29  ;;  %v77_v45 = vsel %vm75_vm7, %v76_v36, %v74_v38 }
  0x19   :  { %v88_v41 = vsel %vm87_vm6, %v63_v20, %v86_v30  ;;  %v84_v46 = vsel %vm82_vm8, %v83_v37, %v81_v39 }
  0x1a   :  { %v91_v48 = vsel %vm89_vm9, %v90_v40, %v88_v41 }
  0x81   :  { %v108_v25 = vpop.permute.xlu1 %107  ;;  %v95_v26 = vpop.permute.xlu0 %94 }
  0x82   :  { %v114_v49 = vmul.f32 %v108_v25, %v70_v43  ;;  %v115_v51 = vmul.f32 %v108_v25, %v77_v45  ;;  %v102_v52 = vmul.f32 %v95_v26, %v15_v9  ;;  %v103_v53 = vmul.f32 %v95_v26, %v16_v10 }
  0x84   :  { %v118_v61 = vadd.f32 %v114_v49, %v102_v52  ;;  %v119_v62 = vadd.f32 %v115_v51, %v103_v53 }
  0x85   :  { %v112_v33 = vpop.permute.xlu1 %111  ;;  %v100_v34 = vpop.permute.xlu0 %99 }
  0x86   :  { %v116_v54 = vmul.f32 %v112_v33, %v84_v46  ;;  %v117_v56 = vmul.f32 %v112_v33, %v91_v48  ;;  %v104_v57 = vmul.f32 %v100_v34, %v17_v11  ;;  %v105_v58 = vmul.f32 %v100_v34, %v18_v13 }
  0x88   :  { %v120_v63 = vadd.f32 %v116_v54, %v104_v57  ;;  %v121_v0 = vadd.f32 %v117_v56, %v105_v58 }
  0x89   :  { %v30_v44 = vpop.permute.xlu0 %29 }
  0x8a   :  { %v33_v47 = vpop.permute.xlu1 %32  ;;  %vm34_vm11 = vcmp.eq.s32.totalorder %v26_v42, %v30_v44  ;;  %vm35_vm13 = vcmp.eq.s32.totalorder %v27_v50, %v30_v44 }
  0x8b   :  { %vm36_vm15 = vcmp.eq.s32.totalorder %v26_v42, %v33_v47  ;;  %vm37_vm1 = vcmp.eq.s32.totalorder %v27_v50, %v33_v47 }
  0x8d   :  { %v44_v55 = vpop.permute.xlu0 %43 }
  0x8e   :  { %vm48_vm10 = vcmp.eq.s32.totalorder %v44_v55, 1  ;;  %v47_v59 = vpop.permute.xlu1 %46 }
  0x8f   :  { %vm49_vm12 = vcmp.eq.s32.totalorder %v47_v59, 1  ;;  %vm248_vm14 = vmand %vm34_vm11, %vm48_vm10 }
  0x90   :  { %vm51_vm0 = vmand %vm35_vm13, %vm48_vm10 }
  0x91   :  { %vm52_vm2 = vmand %vm36_vm15, %vm49_vm12 }
  0x92   :  { %v124_v1 = vpop.permute.xlu0 %123  ;;  %vm53_vm3 = vmand %vm37_vm1, %vm49_vm12 }
  0x93   :  { %v130_v2 = vsel %vm248_vm14, %v124_v1, %v118_v61  ;;  %v131_v3 = vsel %vm51_vm0, %v124_v1, %v119_v62  ;;  %v128_v4 = vpop.permute.xlu1 %127 }
  0x94   :  { %134 = vst [vmem:[#allocation2] sm:$0xff] %v130_v2  ;;  %135 = vst [vmem:[#allocation2 + $0x8] sm:$0xff] %v131_v3  ;;  %v132_v5 = vsel %vm52_vm2, %v128_v4, %v120_v63  ;;  %v133_v6 = vsel %vm53_vm3, %v128_v4, %v121_v0 }
  0x95   :  { %136 = vst [vmem:[#allocation2 + $0x10] sm:$0xff] %v132_v5  ;;  %137 = vst [vmem:[#allocation2 + $0x18] sm:$0xff] %v133_v6 }
  0x96   :  { %184 = shalt.err (!%p181_p4)
}
  0x97   :  { %s185_s30 = scalar_lea.hbm %s269_s3, 512 }
  0x98   :  { %p186_p5 = scmp.ne.s32.totalorder %s269_s3, %s185_s30  ;;  %p189_p6 = scmp.lt.u32.totalorder %s185_s30, %s269_s3 }
  0x9a   :  { %p191_p7 = pnand %p189_p6, %p186_p5 }
  0x9c   :  { %194 = shalt.err (!%p191_p7)
}
  0x9d   :  { %s201_s8 = smov 256   ;;  %s202_s9 = smov 16  }
  0x9e   :  { %149 = dma.vmem_to_hbm [thread:$0]  %s144_s26, 512, %s269_s3, [#allocation3], %s201_s8, %s201_s8, %s202_s9  }
  0x9f   :  { %195 = dma.done.wait [#allocation3], 512  }
  0xa0   :  { %196 = vsyncadd [#allocation3], 4294966784 }
  0xa1   :  { %153 = vsyncpa [#allocation3], 1 }

</bundles_post_ra>
